<compile_context>
chip_gen: v7x
topology: tpu7x:2x2x1
jax: 0.10.0
libtpu: 0.0.40
codegen_flags: <defaults>
</compile_context>

<pallas_src>
import math

import jax
import jax.numpy as jnp
from jax.experimental import pallas as pl
from jax.experimental.pallas import tpu as pltpu

_LEAKY_SLOPE = 0.2


def _leaky_relu(v):
    # slope in (0, 1)  =>  leaky_relu(v) == max(v, slope * v)   (pure VPU)
    return jnp.maximum(v, _LEAKY_SLOPE * v)


def pose_fcnn_kernel(pose_ref, w1_ref, b1_ref, w2_ref, b2_ref, out_ref):
    # pose_ref : (B, P)     raw landmarks
    # w1_ref   : (P, Hd)    first linear weight (input-major)
    # b1_ref   : (1, Hd)
    # w2_ref   : (Hd, TO)   output-tile slice of the second linear weight
    # b2_ref   : (1, TO)
    # out_ref  : (B, TO)    output-tile slice of the flat pose features
    p = pose_ref[...] * 2.0 - 1.0                                   # PoseNormalize
    h = jnp.dot(p, w1_ref[...],
                preferred_element_type=jnp.float32) + b1_ref[...]   # (B, Hd)
    h = _leaky_relu(h)
    o = jnp.dot(h, w2_ref[...],
                preferred_element_type=jnp.float32) + b2_ref[...]   # (B, TO)
    out_ref[...] = _leaky_relu(o)


def _pick_output_tile(out_size):
    """Largest multiple-of-128 divisor of out_size that leaves >= 2 grid steps.

    Falls back to the full (untiled) output when out_size is not 128-aligned
    (a full-extent block is exempt from the (8,128) divisibility rule).
    """
    if out_size % 128 != 0:
        return out_size
    start = (out_size // 2) // 128 * 128
    for cand in range(start, 127, -128):
        if out_size % cand == 0:
            return cand
    return out_size


def scalar_pose_fcnn(x, pose_info, w1, b1, w2, b2, output_shape):
    """Functional ScalarPoseFCNN forward.

    x         : (B, Cx, H, W) float32
    pose_info : (B, P)        float32 landmarks (the `batch['landmarks']`)
    w1        : (P, Hd), b1 : (Hd,)
    w2        : (Hd, prod(output_shape)), b2 : (prod(output_shape),)
    Returns concat([x, pose], axis=1).
    """
    B, P = pose_info.shape
    Hd = w1.shape[1]
    O = math.prod(output_shape)
    assert w2.shape == (Hd, O) and b2.shape == (O,)

    TO = _pick_output_tile(O)
    grid = (O // TO,)

    b1_2d = b1.reshape(1, Hd).astype(jnp.float32)
    b2_2d = b2.reshape(1, O).astype(jnp.float32)

    pose_flat = pl.pallas_call(
        pose_fcnn_kernel,
        out_shape=jax.ShapeDtypeStruct((B, O), jnp.float32),
        grid_spec=pltpu.PrefetchScalarGridSpec(
            num_scalar_prefetch=0,
            grid=grid,
            in_specs=[
                pl.BlockSpec((B, P), lambda j: (0, 0)),    # landmarks (tiny)
                pl.BlockSpec((P, Hd), lambda j: (0, 0)),   # W1 (tiny)
                pl.BlockSpec((1, Hd), lambda j: (0, 0)),   # b1
                pl.BlockSpec((Hd, TO), lambda j: (0, j)),  # W2 tile (lane-dense)
                pl.BlockSpec((1, TO), lambda j: (0, j)),   # b2 tile
            ],
            out_specs=pl.BlockSpec((B, TO), lambda j: (0, j)),
        ),
        compiler_params=pltpu.CompilerParams(
            dimension_semantics=("parallel",)),
    )(pose_info.astype(jnp.float32), w1.astype(jnp.float32), b1_2d,
      w2.astype(jnp.float32), b2_2d)

    pose = pose_flat.reshape(B, *output_shape)
    # ScalarPoseFCNN: when x is a 1x1 "scalar" feature map, collapse spatial.
    if x.shape[0] == 1 and x.shape[2] == 1 and x.shape[3] == 1:
        pose = jnp.mean(pose, axis=(2, 3), keepdims=True)
    return jnp.concatenate([x, pose], axis=1)


def scalar_pose_fcnn_module_forward(inp, params, output_shape):
    """Mirrors the PyTorch module signature: takes/returns (x, mask, batch)."""
    x, mask, batch = inp
    batch = dict(batch)                       # do not mutate caller's dict
    pose_info = batch.pop('landmarks')        # == `del batch['landmarks']`
    x = scalar_pose_fcnn(x, pose_info, params['w1'], params['b1'],
                         params['w2'], params['b2'], output_shape)
    return x, mask, batch


def scalar_pose_fcnn_ref(x, pose_info, w1, b1, w2, b2, output_shape):
    """Pure-JAX reference matching the PyTorch forward."""
    p = pose_info * 2.0 - 1.0
    h = p @ w1 + b1
    h = jnp.where(h >= 0, h, _LEAKY_SLOPE * h)
    o = h @ w2 + b2
    o = jnp.where(o >= 0, o, _LEAKY_SLOPE * o)
    pose = o.reshape(-1, *output_shape)
    if x.shape[0] == 1 and x.shape[2] == 1 and x.shape[3] == 1:
        pose = jnp.mean(pose, axis=(2, 3), keepdims=True)
    return jnp.concatenate([x, pose], axis=1)


if __name__ == "__main__":
    B = 2
    POSE_SIZE = 14                 # e.g. 7 keypoints x 2 coordinates
    HIDDEN = 32
    OUTPUT_SHAPE = (4, 16, 16)     # (C_pose, H, W) -> output_size = 1024
    CX, H, W = 4, 16, 16

    key = jax.random.PRNGKey(0)
    kx, kp, k1, k2, k3, k4 = jax.random.split(key, 6)

    x = jax.random.normal(kx, (B, CX, H, W), jnp.float32)
    landmarks = jax.random.uniform(kp, (B, POSE_SIZE), jnp.float32)  # in [0, 1]

    O = math.prod(OUTPUT_SHAPE)
    # Linear weights stored input-major (in, out) == PyTorch weight.T; any
    # equalized-lr scale of deep_privacy's layers.Linear is folded in.
    w1 = 0.1 * jax.random.normal(k1, (POSE_SIZE, HIDDEN), jnp.float32)
    b1 = 0.1 * jax.random.normal(k2, (HIDDEN,), jnp.float32)
    w2 = 0.1 * jax.random.normal(k3, (HIDDEN, O), jnp.float32)
    b2 = 0.1 * jax.random.normal(k4, (O,), jnp.float32)

    params = dict(w1=w1, b1=b1, w2=w2, b2=b2)
    mask = jnp.ones((B, 1, H, W), jnp.float32)
    batch = {'landmarks': landmarks, 'other_key': jnp.zeros((B,), jnp.float32)}

    out_x, out_mask, out_batch = scalar_pose_fcnn_module_forward(
        (x, mask, batch), params, OUTPUT_SHAPE)
    out_x = jax.block_until_ready(out_x)

    ref = scalar_pose_fcnn_ref(x, landmarks, w1, b1, w2, b2, OUTPUT_SHAPE)
    assert out_x.shape == (B, CX + OUTPUT_SHAPE[0], H, W)
    assert 'landmarks' not in out_batch
    assert 'other_key' in out_batch
    assert jnp.allclose(out_x, ref, atol=1e-5, rtol=1e-5), "mismatch vs reference"

    print("KERNEL_OK")
</pallas_src>

<mosaic_0001>
module attributes {stable_mosaic.version = 11 : i64} {
  func.func @pose_fcnn_kernel(%arg0: i32, %arg1: memref<2x14xf32, #tpu.memory_space<vmem>>, %arg2: memref<14x32xf32, #tpu.memory_space<vmem>>, %arg3: memref<1x32xf32, #tpu.memory_space<vmem>>, %arg4: memref<32x512xf32, #tpu.memory_space<vmem>>, %arg5: memref<1x512xf32, #tpu.memory_space<vmem>>, %arg6: memref<2x512xf32, #tpu.memory_space<vmem>>) attributes {dimension_semantics = [#tpu.dimension_semantics<parallel>], iteration_bounds = array<i64: 2>, scalar_prefetch = 0 : i64, scratch_operands = 0 : i64, tpu.core_type = #tpu.core_type<tc>, window_params = [{pipeline_mode = #tpu.pipeline_mode<synchronous>, transform_indices = @transform_0, window_bounds = array<i64: 2, 14>}, {pipeline_mode = #tpu.pipeline_mode<synchronous>, transform_indices = @transform_1, window_bounds = array<i64: 14, 32>}, {pipeline_mode = #tpu.pipeline_mode<synchronous>, transform_indices = @transform_2, window_bounds = array<i64: 1, 32>}, {transform_indices = @transform_3, window_bounds = array<i64: 32, 512>}, {transform_indices = @transform_4, window_bounds = array<i64: 1, 512>}, {transform_indices = @transform_5, window_bounds = array<i64: 2, 512>}]} {
    %c0 = arith.constant 0 : index
    %c0_0 = arith.constant 0 : index
    %0 = vector.load %arg1[%c0, %c0_0] : memref<2x14xf32, #tpu.memory_space<vmem>>, vector<2x14xf32>
    %cst = arith.constant 2.000000e+00 : f32
    %1 = vector.broadcast %cst : f32 to vector<2x14xf32>
    %2 = arith.mulf %0, %1 : vector<2x14xf32>
    %cst_1 = arith.constant 1.000000e+00 : f32
    %3 = vector.broadcast %cst_1 : f32 to vector<2x14xf32>
    %4 = arith.subf %2, %3 : vector<2x14xf32>
    %c0_2 = arith.constant 0 : index
    %c0_3 = arith.constant 0 : index
    %5 = vector.load %arg2[%c0_2, %c0_3] : memref<14x32xf32, #tpu.memory_space<vmem>>, vector<14x32xf32>
    %cst_4 = arith.constant dense<0.000000e+00> : vector<2x32xf32>
    %6 = tpu.matmul %4, %5, %cst_4 {dimension_numbers = #tpu.dot_dimension_numbers<[1], [0], [0], [1], [0, 0, 1, 1], [], []>} : vector<2x14xf32>, vector<14x32xf32>, vector<2x32xf32> -> vector<2x32xf32>
    %c0_5 = arith.constant 0 : index
    %c0_6 = arith.constant 0 : index
    %7 = vector.load %arg3[%c0_5, %c0_6] : memref<1x32xf32, #tpu.memory_space<vmem>>, vector<1x32xf32>
    %8 = vector.broadcast %7 : vector<1x32xf32> to vector<2x32xf32>
    %9 = arith.addf %6, %8 : vector<2x32xf32>
    %cst_7 = arith.constant 2.000000e-01 : f32
    %10 = vector.broadcast %cst_7 : f32 to vector<2x32xf32>
    %11 = arith.mulf %10, %9 : vector<2x32xf32>
    %12 = arith.maximumf %9, %11 : vector<2x32xf32>
    %c0_8 = arith.constant 0 : index
    %c0_9 = arith.constant 0 : index
    %13 = vector.load %arg4[%c0_8, %c0_9] : memref<32x512xf32, #tpu.memory_space<vmem>>, vector<32x512xf32>
    %cst_10 = arith.constant dense<0.000000e+00> : vector<2x512xf32>
    %14 = tpu.matmul %12, %13, %cst_10 {dimension_numbers = #tpu.dot_dimension_numbers<[1], [0], [0], [1], [0, 0, 1, 1], [], []>} : vector<2x32xf32>, vector<32x512xf32>, vector<2x512xf32> -> vector<2x512xf32>
    %c0_11 = arith.constant 0 : index
    %c0_12 = arith.constant 0 : index
    %15 = vector.load %arg5[%c0_11, %c0_12] : memref<1x512xf32, #tpu.memory_space<vmem>>, vector<1x512xf32>
    %16 = vector.broadcast %15 : vector<1x512xf32> to vector<2x512xf32>
    %17 = arith.addf %14, %16 : vector<2x512xf32>
    %cst_13 = arith.constant 2.000000e-01 : f32
    %18 = vector.broadcast %cst_13 : f32 to vector<2x512xf32>
    %19 = arith.mulf %18, %17 : vector<2x512xf32>
    %20 = arith.maximumf %17, %19 : vector<2x512xf32>
    %c0_14 = arith.constant 0 : index
    %c0_15 = arith.constant 0 : index
    %21 = vector.load %arg6[%c0_14, %c0_15] : memref<2x512xf32, #tpu.memory_space<vmem>>, vector<2x512xf32>
    tpu.vector_store %arg6[%c0_14, %c0_15], %20 {strides = array<i32>} : memref<2x512xf32, #tpu.memory_space<vmem>>, vector<2x512xf32>,
    return
  }
  func.func @transform_0(%arg0: i32) -> (i32, i32) {
    %c0_i32 = arith.constant 0 : i32
    %c0_i32_0 = arith.constant 0 : i32
    %c0_i32_1 = arith.constant 0 : i32
    return %c0_i32, %c0_i32_0 : i32, i32
  }
  func.func @transform_1(%arg0: i32) -> (i32, i32) {
    %c0_i32 = arith.constant 0 : i32
    %c0_i32_0 = arith.constant 0 : i32
    %c0_i32_1 = arith.constant 0 : i32
    return %c0_i32, %c0_i32_0 : i32, i32
  }
  func.func @transform_2(%arg0: i32) -> (i32, i32) {
    %c0_i32 = arith.constant 0 : i32
    %c0_i32_0 = arith.constant 0 : i32
    %c0_i32_1 = arith.constant 0 : i32
    return %c0_i32, %c0_i32_0 : i32, i32
  }
  func.func @transform_3(%arg0: i32) -> (i32, i32) {
    %c0_i32 = arith.constant 0 : i32
    %c0_i32_0 = arith.constant 0 : i32
    return %c0_i32, %arg0 : i32, i32
  }
  func.func @transform_4(%arg0: i32) -> (i32, i32) {
    %c0_i32 = arith.constant 0 : i32
    %c0_i32_0 = arith.constant 0 : i32
    return %c0_i32, %arg0 : i32, i32
  }
  func.func @transform_5(%arg0: i32) -> (i32, i32) {
    %c0_i32 = arith.constant 0 : i32
    %c0_i32_0 = arith.constant 0 : i32
    return %c0_i32, %arg0 : i32, i32
  }
}

</mosaic_0001>

<bundles_post_ra>
// kernel: tpu_custom_call.1
= control target key start
LH: loop header
LB: loop body
LE: loop exit
PB: predicated region body
PF: predicated region fallthrough
CT: control target
= control target key end

     0   :  { %s1309_s0 = inlined_call_operand.hbm [shape: f32[2,14], index: 0, kind: input, shape index: {}]   ;;  %s1310_s1 = inlined_call_operand.hbm [shape: f32[14,32], index: 1, kind: input, shape index: {}]   ;;  %s1311_s2 = inlined_call_operand.vmem [shape: f32[1,32], index: 2, kind: input, shape index: {}]   ;;  %s1312_s3 = inlined_call_operand.hbm [shape: f32[32,1024], index: 3, kind: input, shape index: {}]   ;;  %s1313_s4 = inlined_call_operand.vmem [shape: f32[1,1024], index: 4, kind: input, shape index: {}]   ;;  %s1314_s5 = inlined_call_operand.hbm [shape: f32[2,1024], index: 5, kind: output, shape index: {}]  }
   0x1   :  { %1320 = sst [smem:[#allocation14_spill]] %s1309_s0 }
   0x2   :  { %10 = vsyncpa [#allocation3], 0 }
   0x3   :  { %11 = vsyncpa [#allocation6], 0 }
   0x4   :  { %12 = vsyncpa [#allocation4], 0 }
   0x5   :  { %14 = vsyncpa [#allocation4 + $0x1], 0  ;;  %s1049_s18 = smov 0   ;;  %s1051_s19 = smov 0  }
   0x6   :  { %s1053_s20 = smov 0   ;;  %s1055_s21 = smov 0  }
   0x7 LB: > { %s1070_s22 = sadd.s32 4294967295, %s1003_s21   ;;  %s709_s23 = sadd.s32 4294967294, %s1003_s21   ;;  %s1003_s21 = sphi %s1055_s21, %s1345_s21   ;;  %s999_s20 = sphi %s1053_s20, %s1344_s20   ;;  %s995_s19 = sphi %s1051_s19, %s1343_s19   ;;  %s991_s18 = sphi %s1049_s18, %s1342_s18  }
   0x8   : > { %s1074_s24 = sadd.s32 1, %s1003_s21   ;;  %s90_s25 = sadd.s32 1, %s999_s20 }
   0x9   : > { %s87_s26 = ssub.s32 %s1003_s21, %s1074_s24  ;;  %p97_p0 = scmp.ne.s32.totalorder %s999_s20, %s995_s19 }
   0xa   : > { %p88_p1 = scmp.eq.s32.totalorder %s87_s26, 0  ;;  %p98_p2 = scmp.eq.s32.totalorder %s1003_s21, 0 }
   0xb   : > { %p103_p3 = scmp.ne.s32.totalorder %s995_s19, %s991_s18  ;;  %p1315_p4 = scmp.eq.s32.totalorder %s1070_s22, 0 }
   0xc   : > { %s1086_s27 = scalar_select %p88_p1, %s999_s20, %s90_s25  }
   0xd   : > { %p1088_p5 = por %p98_p2, %p97_p0  ;;  %p1094_p6 = por %p1315_p4, %p103_p3 }
   0xe   : > { %1321 = sst [smem:[#allocation13_spill]] %s1086_s27  ;;  %p153_p7 = scmp.eq.s32.totalorder %s1070_s22, 1 }
   0xf   : > { %s1323_s29 = scalar_select %p1094_p6, 1, 0 }
  0x10   : > { %p159_p8 = scmp.eq.s32.totalorder %s709_s23, 1  ;;  %p710_p9 = scmp.ge.s32.totalorder %s1003_s21, 1 }
  0x11   : > { %p166_p10 = scmp.lt.s32.totalorder %s1003_s21, 3  ;;  %p1101_p11 = por %p153_p7, %p97_p0 }
  0x12   : > { %p1105_p12 = por %p159_p8, %p103_p3  ;;  %s1005_s8 = smov [#allocation2]  }
  0x13   : > { %s1324_s30 = scalar_select %p1101_p11, 1, 0 }
  0x14   : > { %s1325_s6 = scalar_select %p1105_p12, 1, 0 }
  0x15   : > { %p1109_p13 = pnand %p710_p9, %p166_p10  ;;  %s179_s9 = sshll.u32 %s1005_s8, 4  ;;  %s180_s9 = int_to_ptr.vmem [resolvable:$true] %s179_s9 }
  0x16   : > { %p795_p4 = scmp.lt.s32.totalorder %s1003_s21, 2  ;;  %p1327_p0 = scmp.eq.s32.totalorder %s1070_s22, 0 }
  0x17   : > { %s1326_s7 = scalar_select %p1109_p13, 1, 0 }
  0x18   : > { %p778_p2 = pneg %p1109_p13  ;;  %p1125_p3 = pnand %p795_p4, %p1088_p5 }
  0x19   : > { %s1006_s12 = smov [#allocation5]   ;;  %s1330_s0 = sld [smem:[#allocation14_spill]] }
  0x1a   : > { %p1119_p7 = pnand %p778_p2, %p1327_p0  ;;  %s189_s13 = sshll.u32 %s1006_s12, 4  ;;  %s1129_s13 = int_to_ptr.vmem [resolvable:$true] %s189_s13 }
  0x1b   : > { %s1329_s11 = scalar_select %p1125_p3, 1, 0 }
  0x1c   : > { %p845_p9 = pneg %p1119_p7 }
  0x1f   : > { %s843_s16 = scalar_lea.hbm %s1330_s0, 32 }
  0x20   : > { %p844_p8 = scmp.ne.s32.totalorder %s1330_s0, %s843_s16  ;;  %p850_p10 = scmp.lt.u32.totalorder %s843_s16, %s1330_s0 }
  0x22   : > { %p846_p4 = pnand %p845_p9, %p844_p8 }
  0x24   : > { %p847_p5 = pneg %p846_p4 }
  0x26   : > { %p852_p2 = pnand %p850_p10, %p847_p5 }
  0x28   : > { %855 = shalt.err (!%p852_p2)
}
  0x29   : > { %s856_s28 = scalar_lea.vmem %s180_s9, 32  ;;  %p864_p11 = scmp.lt.s32.totalorder %s180_s9, %s180_s9 }
  0x2a   : > { %p857_p0 = scmp.ne.s32.totalorder %s180_s9, %s856_s28  ;;  %p865_p6 = scmp.lt.s32.totalorder %s856_s28, %s856_s28 }
  0x2c   : > { %p859_p1 = pnand %p857_p0, %p845_p9  ;;  %p866_p13 = por %p865_p6, %p864_p11 }
  0x2e   : > { %p860_p12 = pneg %p859_p1 }
  0x30   : > { %p867_p3 = pnand %p866_p13, %p860_p12 }
  0x32   : > { %870 = shalt.err (!%p867_p3)
}
  0x33   : > { %781 = dma.hbm_to_vmem [thread:$0]  (!%p1119_p7), %s1330_s0, 32, %s180_s9, [#allocation3]  }
  0x34   : > { %s206_s14 = sand.u32 1, %s1003_s21   ;;  %s871_s17 = scalar_lea.hbm %s1310_s1, 256 }
  0x35   : > { %p872_p1 = scmp.ne.s32.totalorder %s1310_s1, %s871_s17  ;;  %p878_p12 = scmp.lt.u32.totalorder %s871_s17, %s1310_s1 }
  0x37   : > { %p874_p6 = pnand %p872_p1, %p845_p9 }
  0x39   : > { %p875_p11 = pneg %p874_p6 }
  0x3b   : > { %p880_p13 = pnand %p878_p12, %p875_p11 }
  0x3d   : > { %883 = shalt.err (!%p880_p13)
}
  0x3e   : > { %s884_s9 = scalar_lea.vmem %s1129_s13, 256  ;;  %p892_p5 = scmp.lt.s32.totalorder %s1129_s13, %s1129_s13 }
  0x3f   : > { %p885_p3 = scmp.ne.s32.totalorder %s1129_s13, %s884_s9  ;;  %p893_p10 = scmp.lt.s32.totalorder %s884_s9, %s884_s9 }
  0x41   : > { %p887_p8 = pnand %p885_p3, %p845_p9  ;;  %p894_p2 = por %p893_p10, %p892_p5 }
  0x43   : > { %p888_p4 = pneg %p887_p8 }
  0x45   : > { %p895_p0 = pnand %p894_p2, %p888_p4 }
  0x47   : > { %898 = shalt.err (!%p895_p0)
}
  0x48   : > { %s1007_s8 = smov 128   ;;  %s1008_s12 = smov 8  }
  0x49   : > { %784 = dma.hbm_to_vmem [thread:$0]  (!%p1119_p7), %s1310_s1, 256, %s1129_s13, [#allocation6], %s1007_s8, %s1007_s8, %s1008_s12  }
  0x4a   : > { %s208_s17 = sand.u32 1, %s999_s20   ;;  %s734_s25 = sshll.u32 %s1003_s21, 9 }
  0x4b   : > { %s714_s23 = sshll.u32 %s208_s17, 7  ;;  %s1184_s9 = scalar_lea.hbm %s1312_s3, %s734_s25 }
  0x4c   : > { %s210_s0 = scalar_lea.vmem [#allocation7], %s714_s23  ;;  %s1188_s10 = scalar_lea.sflag [#allocation3], %s206_s14 }
  0x4d   : > { %s217_s27 = sshll.u32 %s210_s0, 4  ;;  %s899_s15 = scalar_lea.hbm %s1184_s9, 2048  ;;  %s1186_s27 = int_to_ptr.vmem [resolvable:$true] %s217_s27 }
  0x4e   : > { %p900_p7 = scmp.ne.s32.totalorder %s1184_s9, %s899_s15  ;;  %p1331_p9 = scmp.ne.s32.totalorder %s1329_s11, 0 }
  0x4f   : > { %s904_s12 = scalar_lea.hbm %s1312_s3, 4096  ;;  %p905_p12 = scmp.lt.u32.totalorder %s1184_s9, %s1312_s3 }
  0x50   : > { %p901_p1 = pneg %p1331_p9  ;;  %p906_p13 = scmp.lt.u32.totalorder %s904_s12, %s899_s15 }
  0x51   : > { %p908_p8 = scmp.lt.u32.totalorder %s899_s15, %s1184_s9 }
  0x52   : > { %p902_p6 = pnand %p901_p1, %p900_p7  ;;  %p907_p3 = por %p906_p13, %p905_p12 }
  0x54   : > { %p903_p11 = pneg %p902_p6  ;;  %p909_p4 = por %p908_p8, %p907_p3 }
  0x56   : > { %p910_p5 = pnand %p909_p4, %p903_p11 }
  0x58   : > { %913 = shalt.err (!%p910_p5)
}
  0x59   : > { %s914_s0 = scalar_lea.vmem %s1186_s27, 2048  ;;  %s1009_s14 = smov [#allocation7]  }
  0x5a   : > { %p915_p10 = scmp.ne.s32.totalorder %s1186_s27, %s914_s0  ;;  %s919_s23 = sshll.u32 %s1009_s14, 4  ;;  %s920_s23 = int_to_ptr.vmem [resolvable:$false] %s919_s23 }
  0x5b   : > { %s921_s25 = scalar_lea.vmem %s920_s23, 4096  ;;  %p922_p7 = scmp.lt.s32.totalorder %s1186_s27, %s920_s23 }
  0x5c   : > { %p917_p2 = pnand %p915_p10, %p901_p1  ;;  %p923_p6 = scmp.lt.s32.totalorder %s921_s25, %s914_s0 }
  0x5e   : > { %p918_p0 = pneg %p917_p2  ;;  %p924_p12 = por %p923_p6, %p922_p7 }
  0x60   : > { %p925_p13 = pnand %p924_p12, %p918_p0 }
  0x62   : > { %928 = shalt.err (!%p925_p13)
}
  0x63   : > { %s1010_s26 = smov 1024   ;;  %s1011_s28 = smov 512  }
  0x64   : > { %s1012_s15 = smov 32   ;;  %p1332_p1 = scmp.ne.s32.totalorder %s1326_s7, 0 }
  0x65   : > { %788 = dma.hbm_to_vmem [thread:$0]  (!%p1331_p9), %s1184_s9, 2048, %s1186_s27, %s1188_s10, %s1010_s26, %s1011_s28, %s1012_s15  }
  0x66   : > { %237 = sbr.rel (%p1332_p1) target bundleno = 583 (0x247), region = 40  ;;  %p1333_p11 = scmp.eq.s32.totalorder (!%p1332_p1), %s1070_s22, 0 }
  0x6d   : > { %974 = dma.done.wait (%p1333_p11), [#allocation3], 32   ;;  %p1334_p3 = pmov %p1333_p11 }
  0x6f   : > { %976 = vsyncadd (%p1334_p3), [#allocation3], 4294967264  ;;  %p1335_p8 = pmov %p1334_p3 }
  0x70   : > { %p1336_p4 = pmov %p1334_p3 }
  0x71   : > { %978 = dma.done.wait (%p1335_p8), [#allocation6], 256  }
  0x72   : > { %980 = vsyncadd (%p1336_p4), [#allocation6], 4294967040  ;;  %s247_s11 = sand.u32 1, %s1070_s22   ;;  %s1228_s27 = sand.u32 1, %s995_s19  }
  0x73   : > { %s720_s7 = sshll.u32 %s1228_s27, 7  ;;  %s248_s9 = scalar_lea.sflag [#allocation3], %s247_s11 }
  0x74   : > { %s1231_s10 = scalar_lea.vmem [#allocation7], %s720_s7  ;;  %p1337_p9 = scmp.ne.s32.totalorder %s1323_s29, 0 }
  0x76   : > { %982 = dma.done.wait (%p1337_p9), %s248_s9, 2048  }
  0x77   : > { %984 = vsyncadd (%p1337_p9), %s248_s9, 4294965248  ;;  %v1013_v0 = vmov 0.0|0.0   ;;  %vm1014_vm0 = vmmov 0   ;;  %v1015_v1 = vmov 0.0   ;;  %vm305_vm1 = vcmask 1045504   ;;  %v292_v2 = vld [vmem:[#allocation5] sm:$0xff] }
  0x78   : > { %746 = vmatprep.subr.bf16.mxu0 %v1013_v0  ;;  %743 = vmatprep.mubr.msk.f32.mxu0 %vm1014_vm0, %v1015_v1  ;;  %vm1016_vm2 = vmmov 1   ;;  %v293_v3 = vld [vmem:[#allocation5 + $0x8] sm:$0x3f]  ;;  %v289_v4 = vld [vmem:[#allocation2] sm:$0x3]  ;;  %vm301_vm4 = vcmask 113664   ;;  %v399_v38 = vlaneseq }
  0x79   : > { %487 = vmatprep.mubr.f32.mxu1 %v1015_v1  ;;  %vm748_vm3 = vmpackc.low %vm305_vm1, %vm1016_vm2  ;;  %v747_v5 = vpack.c.bf16 %v293_v3, %v292_v2  ;;  %v290_v6 = vmul.f32 2.0, %v289_v4  ;;  %v382_v7 = vld [vmem:[%s1231_s10 + $0x8] sm:$0xff]  ;;  %v384_v9 = vld [vmem:[%s1231_s10 + $0x18] sm:$0xff]  ;;  %vm419_vm5 = vcmask 261120   ;;  %s722_s8 = sshll.u32 %s1070_s22, 2  ;;  %s721_s0 = sshll.u32 %s1228_s27, 3 }
  0x7a   : > { %v386_v8 = vld [vmem:[%s1231_s10 + $0x28] sm:$0xff]  ;;  %v388_v11 = vld [vmem:[%s1231_s10 + $0x38] sm:$0xff]  ;;  %v381_v14 = vld [vmem:[%s1231_s10] sm:$0xff]  ;;  %p284_p5 = scmp.lt.s32.totalorder %s722_s8, 7  ;;  %v400_v39 = vshrl.u32 %v399_v38, 7  ;;  %s735_s14 = sshll.u32 %s1070_s22, 7 }
  0x7b   : > { %v750_v10 = vpack.c.bf16 %v386_v8, %v382_v7  ;;  %749 = vmatpush3.bf16.msk.msra.mxu0 %vm748_vm3, %v747_v5  ;;  %v723_v12 = vadd.f32 -1.0, %v290_v6  ;;  %v758_v13 = vpack.c.bf16 %v388_v11, %v384_v9  ;;  %v385_v15 = vld [vmem:[%s1231_s10 + $0x20] sm:$0xff]  ;;  %v383_v16 = vld [vmem:[%s1231_s10 + $0x10] sm:$0xff]  ;;  %v390_v20 = vld [vmem:[%s1231_s10 + $0x48] sm:$0xff]  ;;  %v1017_v48 = vmov 1983009808   ;;  %s1265_s15 = scalar_lea.hbm %s1314_s5, %s735_s14 }
  0x7c   : > { %v752_v17 = vpack.c.bf16 %v385_v15, %v381_v14  ;;  %v387_v18 = vld [vmem:[%s1231_s10 + $0x30] sm:$0xff]  ;;  %v394_v21 = vld [vmem:[%s1231_s10 + $0x68] sm:$0xff]  ;;  %v392_v22 = vld [vmem:[%s1231_s10 + $0x58] sm:$0xff]  ;;  %s1347_s8 = smov (!%p284_p5, %s722_s8), 7  ;;  %v401_v40 = vsub.s32 0, %v400_v39  ;;  %v409_v41 = vsub.s32 2, %v400_v39  ;;  %v580_v49 = vunpack.c.l.s4 %v1017_v48 }
  0x7d   : > { %751 = vmatprep.subr.bf16.mxu1 %v750_v10  ;;  %759 = vmatprep.subr.bf16.mxu0 %v758_v13  ;;  %v760_v19 = vpack.c.bf16 %v387_v18, %v383_v16  ;;  %v754_v23 = vpack.c.bf16 %v394_v21, %v390_v20  ;;  %v396_v24 = vld [vmem:[%s1231_s10 + $0x78] sm:$0xff]  ;;  %v389_v25 = vld [vmem:[%s1231_s10 + $0x40] sm:$0xff]  ;;  %v391_v29 = vld [vmem:[%s1231_s10 + $0x50] sm:$0xff]  ;;  %s286_s17 = scalar_lea.vmem %s1313_s4, %s1347_s8  ;;  %v405_v43 = vsub.s32 1, %v400_v39  ;;  %v413_v44 = vsub.s32 3, %v400_v39  ;;  %s281_s23 = scalar_lea.vmem [#allocation8], %s721_s0 }
  0x7e   : > { %744 = vmatmul.mubr.msk.f32.vlgmr.msra.gmra.mrb[0].mxu0 %vm301_vm4, %v723_v12  ;;  %753 = vmatpush1.bf16.msra.mxu1 %v752_v17  ;;  %v393_v26 = vld [vmem:[%s1231_s10 + $0x60] sm:$0xff]  ;;  %v762_v27 = vpack.c.bf16 %v396_v24, %v392_v22  ;;  %v395_v30 = vld [vmem:[%s1231_s10 + $0x70] sm:$0xff]  ;;  %v581_v58 = vunpack.c.0.s8 %v580_v49  ;;  %s611_s25 = sshll.u32 %s281_s23, 4  ;;  %s597_s11 = scalar_lea.sflag [#allocation4], %s1228_s27  ;;  %s1267_s25 = int_to_ptr.vmem [resolvable:$true] %s611_s25 }
  0x7f   : > { %558 = vmatprep.mubr.f32.mxu0 %v1015_v1  ;;  %761 = vmatpush1.bf16.msra.mxu0 %v760_v19  ;;  %v756_v28 = vpack.c.bf16 %v393_v26, %v389_v25  ;;  %v764_v31 = vpack.c.bf16 %v395_v30, %v391_v29  ;;  %v724_v32 = vld [vmem:[%s1311_s2] ss:$0 sm:$0xff]  ;;  %s929_s7 = scalar_lea.vmem %s1267_s25, 128  ;;  %p1338_p2 = scmp.ne.s32.totalorder %s1324_s30, 0 }
  0x80   : > { %755 = vmatprep.subr.bf16.mxu1 %v754_v23  ;;  %763 = vmatprep.subr.bf16.mxu0 %v762_v27  ;;  %v397_v42 = vld [vmem:[%s286_s17] sm:$0xf]  ;;  %v584_v3 = vsub.s32 %v581_v58, %v400_v39  ;;  %p930_p10 = scmp.ne.s32.totalorder %s1267_s25, %s929_s7  ;;  %s1018_s22 = smov [#allocation8]  }
  0x81   : > { %v402_v45 = vrot.slane %v397_v42, %v401_v40  ;;  %v410_v46 = vrot.slane %v397_v42, %v409_v41  ;;  %v406_v47 = vrot.slane %v397_v42, %v405_v43  ;;  %v414_v50 = vrot.slane %v397_v42, %v413_v44  ;;  %s933_s9 = sshll.u32 %s1018_s22, 4  ;;  %s934_s9 = int_to_ptr.vmem [resolvable:$false] %s933_s9 }
  0x82   : > { %757 = vmatpush1.bf16.msra.mxu1 %v756_v28  ;;  %p931_p0 = pnand %p930_p10, %p1338_p2  ;;  %s935_s10 = scalar_lea.vmem %s934_s9, 256 }
  0x83   : > { %765 = vmatpush1.bf16.msra.mxu0 %v764_v31  ;;  %p936_p6 = scmp.lt.s32.totalorder %s1267_s25, %s934_s9  ;;  %p937_p12 = scmp.lt.s32.totalorder %s935_s10, %s929_s7 }
  0x84   : > { %p932_p7 = pneg %p931_p0 }
  0x85   : > { %p938_p13 = por %p937_p12, %p936_p6 }
  0x87   : > { %p939_p1 = pnand %p938_p13, %p932_p7 }
 0x151   : > { %v375_v33 = vpop.f32.mrb[0].mxu0 }
 0x152   : > { %v376_v34 = vadd.f32 %v724_v32, %v375_v33  ;;  %v745_v35 = vpop.f32.mrb[1].mxu0 }
 0x154   : > { %v379_v36 = vmul.f32 0.2, %v376_v34 }
 0x156   : > { %v380_v37 = vmax.f32 %v376_v34, %v379_v36 }
 0x158   : > { %727 = vmatmul.mubr.msk.f32.vlgmr.msra.gmra.mrb[0].mxu1 %vm419_vm5, %v380_v37  ;;  %728 = vmatmul.mubr.msk.f32.vlgmr.msra.gmra.mrb[2].mxu0 %vm419_vm5, %v380_v37 }
 0x22b   : > { %v489_v51 = vpop.f32.mrb[0].mxu1  ;;  %v560_v52 = vpop.f32.mrb[2].mxu0 }
 0x22c   : > { %v490_v53 = vadd.f32 %v489_v51, %v402_v45  ;;  %v561_v54 = vadd.f32 %v560_v52, %v410_v46  ;;  %v491_v55 = vpop.f32.mrb[1].mxu1  ;;  %v562_v56 = vpop.f32.mrb[3].mxu0 }
 0x22d   : > { %v492_v57 = vadd.f32 %v491_v55, %v406_v47  ;;  %v563_v59 = vadd.f32 %v562_v56, %v414_v50 }
 0x22e   : > { %v565_v60 = vmul.f32 0.2, %v490_v53  ;;  %v567_v61 = vmul.f32 0.2, %v561_v54 }
 0x22f   : > { %v566_v62 = vmul.f32 0.2, %v492_v57  ;;  %v568_v63 = vmul.f32 0.2, %v563_v59 }
 0x230   : > { %v569_v0 = vmax.f32 %v490_v53, %v565_v60  ;;  %v571_v1 = vmax.f32 %v561_v54, %v567_v61 }
 0x231   : > { %v570_v2 = vmax.f32 %v492_v57, %v566_v62  ;;  %v572_v4 = vmax.f32 %v563_v59, %v568_v63 }
 0x233   : > { %v577_v5 = vcombine.low %v569_v0, %v570_v2  ;;  %v578_v6 = vcombine.low %v571_v1, %v572_v4 }
 0x235   : > { %v585_v7 = vrot.slane %v577_v5, %v584_v3  ;;  %v592_v8 = vrot.slane %v578_v6, %v584_v3 }
 0x237   : > { %v593_v9 = vcombine.low %v585_v7, %v592_v8 }
 0x239   : > { %595 = vst [vmem:[%s281_s23] sm:$0xff] %v593_v9 }
 0x23a   : > { %942 = shalt.err (!%p939_p1)
}
 0x23b   : > { %s943_s27 = scalar_lea.hbm %s1265_s15, 128  ;;  %s947_s8 = scalar_lea.hbm %s1314_s5, 256 }
 0x23c   : > { %p944_p11 = scmp.ne.s32.totalorder %s1265_s15, %s943_s27  ;;  %p948_p4 = scmp.lt.u32.totalorder %s1265_s15, %s1314_s5 }
 0x23d   : > { %p949_p9 = scmp.lt.u32.totalorder %s947_s8, %s943_s27  ;;  %p951_p10 = scmp.lt.u32.totalorder %s943_s27, %s1265_s15 }
 0x23e   : > { %p945_p3 = pnand %p944_p11, %p1338_p2 }
 0x23f   : > { %p950_p5 = por %p949_p9, %p948_p4 }
 0x240   : > { %p946_p8 = pneg %p945_p3 }
 0x241   : > { %p952_p0 = por %p951_p10, %p950_p5 }
 0x243   : > { %p953_p7 = pnand %p952_p0, %p946_p8 }
 0x245   : > { %956 = shalt.err (!%p953_p7)
}
 0x246   : > { %776 = dma.vmem_to_hbm [thread:$0]  (%p1338_p2), %s1267_s25, 128, %s1265_s15, %s597_s11  }
 0x247 PF: > { %s623_s17 = sand.u32 1, %s991_s18   ;;  %p1339_p6 = scmp.ne.s32.totalorder %s1325_s6, 0 }
 0x248   : > { %p1340_p12 = scmp.ge.s32.totalorder %s1003_s21, 2  ;;  %s624_s0 = scalar_lea.sflag [#allocation4], %s623_s17 }
 0x24a   : > { %p790_p13 = pnand %p1340_p12, %p1339_p6 }
 0x24c   : > { %986 = dma.done.wait (!%p790_p13), %s624_s0, 128  }
 0x24d   : > { %988 = vsyncadd (!%p790_p13), %s624_s0, 4294967168  ;;  %s1341_s14 = sld [smem:[#allocation13_spill]]  ;;  %p17_p1 = scmp.ge.s32.totalorder %s1074_s24, 4  }
 0x24e   : > { %s1342_s18 = smov %s995_s19  ;;  %s1343_s19 = smov %s999_s20 }
 0x24f   : > { %s1345_s21 = smov %s1074_s24  ;;  %19 = sbr.rel (!%p17_p1) target bundleno = 7 (0x7), region = 95 }
 0x253   : > { %s1344_s20 = smov %s1341_s14 }
 0x256   :  { %629 = vsyncpa [#allocation3], 1 }
 0x257   :  { %631 = vsyncpa [#allocation3 + $0x1], 1 }
 0x258   :  { %632 = vsyncpa [#allocation6], 1 }
 0x259   :  { %633 = vsyncpa [#allocation4], 1 }
 0x25a   :  { %635 = vsyncpa [#allocation4 + $0x1], 1 }

</bundles_post_ra>
